<compile_context>
chip_gen: v6e
topology: v6e:2x2x1
jax: 0.10.0
libtpu: 0.0.40
codegen_flags: <defaults>
</compile_context>

<pallas_src>
import functools

import jax
import jax.numpy as jnp
from jax.experimental import pallas as pl
from jax.experimental.pallas import tpu as pltpu


def _round_up(x, m):
    return ((x + m - 1) // m) * m


def _vmem_capacity_bytes():
    """Physical per-core VMEM; falls back to the v7x-safe 64 MiB if unqueryable."""
    try:
        return int(pltpu.get_tpu_info().vmem_capacity_bytes)
    except Exception:
        return 64 << 20


def _block_spec(shape, index_map, *, single_buffer=False):
    """BlockSpec helper: single_buffer=True requests Buffered(1) for grid-invariant
    operands (halves their VMEM footprint); degrades gracefully if unsupported."""
    if single_buffer and hasattr(pl, "Buffered"):
        try:
            return pl.BlockSpec(shape, index_map, pipeline_mode=pl.Buffered(1))
        except TypeError:
            pass
    return pl.BlockSpec(shape, index_map)


def _adapter_fused_kernel(x_ref, attn_ref, w1_ref, b1_ref, w2_ref, b2_ref, o_ref, h_ref):
    # x_ref:    (TR, D)    row tile of flattened input (compute dtype, e.g. bf16)
    # attn_ref: (TR, TD)   column tile of the wrapped-module output (residual dtype)
    # w1_ref:   (D, Hp)    down-projection weight (Hp = H padded to multiple of 128)
    # b1_ref:   (1, Hp)    f32
    # w2_ref:   (Hp, TD)   up-projection weight column tile (adapter_scale folded in)
    # b2_ref:   (1, TD)    f32 (adapter_scale folded in)
    # o_ref:    (TR, TD)   output tile (aliases attn in HBM)
    # h_ref:    (TR, Hp)   f32 scratch carrying the bottleneck activation across j

    # Down-projection + ReLU once per row tile (only at the first column tile);
    # bf16 MXU matmul, f32 accumulation.
    @pl.when(pl.program_id(1) == 0)
    def _():
        h = jnp.dot(x_ref[...], w1_ref[...], preferred_element_type=jnp.float32)
        h_ref[...] = jnp.maximum(h + b1_ref[...], 0.0)

    # Up-projection for this column tile; cast h to the weight dtype so both
    # operands take the bf16 MXU path, keep the accumulator in f32.
    z = jnp.dot(h_ref[...].astype(w2_ref.dtype), w2_ref[...],
                preferred_element_type=jnp.float32)
    z = z + b2_ref[...]

    # Residual epilogue fully in f32 vregs; single cast at the final store.
    o_ref[...] = (attn_ref[...].astype(jnp.float32) + z).astype(o_ref.dtype)


def prepare_adapter_params(params, compute_dtype=jnp.bfloat16):
    """One-time setup (hoisted out of the per-call path): pad the bottleneck dim
    H up to a lane-dense multiple of 128, fold adapter_scale into w2/b2, and cast
    the weights to the MXU compute dtype. Zero pad columns of w1/b1 give
    ReLU(0)=0 and the matching zero rows of w2 contribute nothing, so the result
    is mathematically identical."""
    w1 = jnp.asarray(params["w1"], jnp.float32)
    b1 = jnp.asarray(params["b1"], jnp.float32).reshape(1, -1)
    w2 = jnp.asarray(params["w2"], jnp.float32)
    b2 = jnp.asarray(params["b2"], jnp.float32).reshape(1, -1)
    scale = jnp.asarray(params["scale"], jnp.float32).reshape(-1)[0]

    H = w1.shape[1]
    Hp = _round_up(H, 128)
    if Hp != H:
        w1 = jnp.pad(w1, ((0, 0), (0, Hp - H)))
        b1 = jnp.pad(b1, ((0, 0), (0, Hp - H)))
        w2 = jnp.pad(w2, ((0, Hp - H), (0, 0)))

    # Fold the (static) adapter_scale: (h @ w2 + b2) * s == h @ (w2*s) + (b2*s).
    w2 = w2 * scale
    b2 = b2 * scale

    return {
        "w1": w1.astype(compute_dtype),
        "b1": b1,                       # f32
        "w2": w2.astype(compute_dtype),
        "b2": b2,                       # f32
    }


def parallel_adapter_hidden(x_rows, attn_rows, w1, b1, w2, b2, *,
                            tile_rows=512, tile_cols=None):
    """hidden_rows = attn_rows + ReLU(x_rows @ w1 + b1) @ w2 + b2
    (adapter_scale already folded into w2/b2)."""
    R, D = x_rows.shape
    Hp = w1.shape[1]
    assert w1.shape == (D, Hp) and w2.shape == (Hp, D)
    assert b1.shape == (1, Hp) and b2.shape == (1, D)

    act_bytes = jnp.dtype(x_rows.dtype).itemsize
    out_bytes = jnp.dtype(attn_rows.dtype).itemsize
    w_bytes = jnp.dtype(w1.dtype).itemsize

    # Row tile: multiple of 16 (bf16 sublane packing), clamped for small inputs.
    tile_rows = max(16, min(_round_up(int(tile_rows), 16), _round_up(R, 16)))
    # Column tile over the up-projection output dim (full D unless split).
    if tile_cols is None:
        tile_cols = D
    else:
        tile_cols = min(D, max(128, _round_up(int(tile_cols), 128)))

    # VMEM budget: physical capacity minus headroom for compiler scratch.
    cap = _vmem_capacity_bytes() - (8 << 20)

    def footprint(tr, tc):
        nj = pl.cdiv(D, tc)
        w2_buf = 1 if nj == 1 else 2                      # w2/b2 single-buffered if grid-invariant
        need = 2 * tr * D * act_bytes                     # x tile, double-buffered
        need += 2 * 2 * tr * tc * out_bytes               # attn + out tiles, double-buffered
        need += 1 * (D * Hp * w_bytes + Hp * 4)           # w1 + b1, single-buffered
        need += w2_buf * (Hp * tc * w_bytes + tc * 4)     # w2 + b2
        need += tr * Hp * 4                               # f32 h scratch
        return need

    # Shrink the M tile, then split the output columns, until the set fits VMEM.
    while footprint(tile_rows, tile_cols) > cap and tile_rows > 64:
        tile_rows = max(64, _round_up(tile_rows // 2, 16))
    while footprint(tile_rows, tile_cols) > cap and tile_cols > 128:
        tile_cols = max(128, _round_up(tile_cols // 2, 128))

    ni = pl.cdiv(R, tile_rows)
    nj = pl.cdiv(D, tile_cols)
    grid = (ni, nj)

    vmem_limit = int(min(max(footprint(tile_rows, tile_cols) + (4 << 20), 32 << 20), cap))

    # Grid-invariant operands get a single VMEM buffer; operands whose block
    # index changes along the grid keep the default double buffering.
    in_specs = [
        _block_spec((tile_rows, D), lambda i, j: (i, 0)),                       # x rows
        _block_spec((tile_rows, tile_cols), lambda i, j: (i, j)),               # attn tile
        _block_spec((D, Hp), lambda i, j: (0, 0), single_buffer=True),          # w1
        _block_spec((1, Hp), lambda i, j: (0, 0), single_buffer=True),          # b1
        _block_spec((Hp, tile_cols), lambda i, j: (0, j), single_buffer=(nj == 1)),  # w2
        _block_spec((1, tile_cols), lambda i, j: (0, j), single_buffer=(nj == 1)),   # b2
    ]
    out_specs = pl.BlockSpec((tile_rows, tile_cols), lambda i, j: (i, j))

    return pl.pallas_call(
        _adapter_fused_kernel,
        out_shape=jax.ShapeDtypeStruct((R, D), attn_rows.dtype),
        grid_spec=pltpu.PrefetchScalarGridSpec(
            num_scalar_prefetch=0,
            grid=grid,
            in_specs=in_specs,
            out_specs=out_specs,
            scratch_shapes=[pltpu.VMEM((tile_rows, Hp), jnp.float32)],
        ),
        # hidden is written in place over attn_rows (same shape/dtype/tiling).
        input_output_aliases={1: 0},
        compiler_params=pltpu.CompilerParams(
            dimension_semantics=("parallel", "arbitrary"),
            vmem_limit_bytes=vmem_limit,
        ),
    )(x_rows, attn_rows, w1, b1, w2, b2)


def init_params(key, dim, downsample_factor):
    """Deterministic init mirroring Adapter.init_weights (normal std=0.001, clamp +-2*std)."""
    std = 0.001
    h = dim // downsample_factor
    ks = jax.random.split(key, 6)

    def trunc(k, shape):
        return jnp.clip(std * jax.random.normal(k, shape, jnp.float32), -2 * std, 2 * std)

    return {
        "w1": trunc(ks[0], (dim, h)),
        "b1": trunc(ks[1], (1, h)),
        "w2": trunc(ks[2], (h, dim)),
        "b2": trunc(ks[3], (1, dim)),
        # Stand-in wrapped attention module (plain JAX glue): a linear projection
        # returning (attn_output, present) to mimic HF-style attention tuple output.
        "wm": 0.02 * jax.random.normal(ks[4], (dim, dim), jnp.float32),
        "bm": 0.02 * jax.random.normal(ks[5], (dim,), jnp.float32),
        # scaled=False -> adapter_scale = 1
        "scale": jnp.ones((1,), jnp.float32),
    }


def wrapped_module(x, params):
    # Stand-in for self.module: returns a tuple (attn_output, *outputs).
    attn_out = jnp.einsum("bsd,de->bse", x, params["wm"].astype(x.dtype)) \
        + params["bm"].astype(x.dtype)
    present = jnp.zeros((1,), x.dtype)
    return (attn_out, present)


def parallel_adapter_wrapper_forward(x, prepared, params, *, tile_rows=512,
                                     tile_cols=None, compute_dtype=jnp.bfloat16):
    attn_outputs = wrapped_module(x, params)
    attn_output, outputs = attn_outputs[0], attn_outputs[1:]

    B, S, D = x.shape
    # x goes through the MXU in compute_dtype; attn stays in the residual dtype
    # (f32 or bf16 depending on the surrounding model) and the output aliases it.
    x_rows = x.reshape(B * S, D).astype(compute_dtype)
    attn_rows = attn_output.reshape(B * S, D)

    hidden_rows = parallel_adapter_hidden(
        x_rows, attn_rows,
        prepared["w1"], prepared["b1"], prepared["w2"], prepared["b2"],
        tile_rows=tile_rows, tile_cols=tile_cols,
    )
    return (hidden_rows.reshape(B, S, D),) + outputs


def reference_forward(x, params, *, compute_dtype=jnp.bfloat16):
    # Pure-JAX reference with the same mixed-precision policy as the kernel.
    attn_outputs = wrapped_module(x, params)
    attn_output, outputs = attn_outputs[0], attn_outputs[1:]
    xq = x.astype(compute_dtype)
    h = jnp.dot(xq, params["w1"].astype(compute_dtype),
                preferred_element_type=jnp.float32) + params["b1"]
    h = jnp.maximum(h, 0.0).astype(compute_dtype)
    z = jnp.dot(h, params["w2"].astype(compute_dtype),
                preferred_element_type=jnp.float32) + params["b2"]
    hidden = attn_output.astype(jnp.float32) + z * params["scale"].reshape(-1)[0]
    return (hidden.astype(attn_output.dtype),) + outputs


if __name__ == "__main__":
    B, S, D = 2, 8, 128         # batch, seq, hidden dim (D multiple of 128 -> lane-dense)
    downsample_factor = 4       # bottleneck = 32, padded to 128 inside prepare_adapter_params

    key = jax.random.PRNGKey(0)
    kx, kp = jax.random.split(key)
    x = jax.random.normal(kx, (B, S, D), jnp.float32)
    params = init_params(kp, D, downsample_factor)

    # Scale the adapter weights up so the adapter branch is non-negligible and the
    # tolerance check is meaningful (the faithful std=0.001 init makes it ~1e-4).
    for k in ("w1", "b1", "w2", "b2"):
        params[k] = params[k] * 300.0

    # One-time hoisted weight prep (pad/cast/scale-fold), outside the per-call path.
    prepared = prepare_adapter_params(params, compute_dtype=jnp.bfloat16)

    fwd = jax.jit(functools.partial(parallel_adapter_wrapper_forward, tile_rows=512))
    out = fwd(x, prepared, params)
    hidden = jax.block_until_ready(out[0])

    ref = reference_forward(x, params)[0]
    assert hidden.shape == ref.shape
    err = float(jnp.max(jnp.abs(hidden.astype(jnp.float32) - ref.astype(jnp.float32))))
    assert jnp.allclose(hidden.astype(jnp.float32), ref.astype(jnp.float32),
                        atol=5e-3, rtol=5e-3), f"f32-residual mismatch vs reference (max err {err})"

    # Secondary run with bf16 residual/output streams (review item: when the model
    # runs in bf16, the kernel's HBM traffic shrinks from ~10*D to ~6*D bytes/row).
    x_bf16 = x.astype(jnp.bfloat16)
    out_bf16 = fwd(x_bf16, prepared, params)
    hidden_bf16 = jax.block_until_ready(out_bf16[0])
    assert hidden_bf16.dtype == jnp.bfloat16
    assert jnp.allclose(hidden_bf16.astype(jnp.float32), ref.astype(jnp.float32),
                        atol=7e-2, rtol=7e-2), "bf16-residual mismatch vs reference"

    print("KERNEL_OK")
</pallas_src>

<mosaic_0001>
module attributes {stable_mosaic.version = 11 : i64} {
  func.func @_adapter_fused_kernel(%arg0: i32, %arg1: i32, %arg2: memref<16x128xbf16, #tpu.memory_space<vmem>>, %arg3: memref<16x128xf32, #tpu.memory_space<vmem>>, %arg4: memref<128x128xbf16, #tpu.memory_space<vmem>>, %arg5: memref<1x128xf32, #tpu.memory_space<vmem>>, %arg6: memref<128x128xbf16, #tpu.memory_space<vmem>>, %arg7: memref<1x128xf32, #tpu.memory_space<vmem>>, %arg8: memref<16x128xf32, #tpu.memory_space<vmem>>, %arg9: memref<16x128xf32, #tpu.memory_space<vmem>>) attributes {dimension_semantics = [#tpu.dimension_semantics<parallel>, #tpu.dimension_semantics<arbitrary>], iteration_bounds = array<i64: 1, 1>, scalar_prefetch = 0 : i64, scratch_operands = 1 : i64, tpu.core_type = #tpu.core_type<tc>, window_params = [{transform_indices = @transform_0, window_bounds = array<i64: 16, 128>}, {transform_indices = @transform_1, window_bounds = array<i64: 16, 128>}, {pipeline_mode = #tpu.pipeline_mode<synchronous>, transform_indices = @transform_2, window_bounds = array<i64: 128, 128>}, {pipeline_mode = #tpu.pipeline_mode<synchronous>, transform_indices = @transform_3, window_bounds = array<i64: 1, 128>}, {pipeline_mode = #tpu.pipeline_mode<synchronous>, transform_indices = @transform_4, window_bounds = array<i64: 128, 128>}, {pipeline_mode = #tpu.pipeline_mode<synchronous>, transform_indices = @transform_5, window_bounds = array<i64: 1, 128>}, {transform_indices = @transform_6, window_bounds = array<i64: 16, 128>}]} {
    %c0_i32 = arith.constant 0 : i32
    %0 = arith.cmpi eq, %arg1, %c0_i32 : i32
    %1 = arith.extui %0 : i1 to i32
    %c0_i32_0 = arith.constant 0 : i32
    %2 = arith.cmpi ne, %1, %c0_i32_0 : i32
    scf.if %2 {
      %c0_10 = arith.constant 0 : index
      %c0_11 = arith.constant 0 : index
      %13 = vector.load %arg2[%c0_10, %c0_11] : memref<16x128xbf16, #tpu.memory_space<vmem>>, vector<16x128xbf16>
      %c0_12 = arith.constant 0 : index
      %c0_13 = arith.constant 0 : index
      %14 = vector.load %arg4[%c0_12, %c0_13] : memref<128x128xbf16, #tpu.memory_space<vmem>>, vector<128x128xbf16>
      %cst_14 = arith.constant dense<0.000000e+00> : vector<16x128xf32>
      %15 = tpu.matmul %13, %14, %cst_14 {dimension_numbers = #tpu.dot_dimension_numbers<[1], [0], [0], [1], [0, 0, 1, 1], [], []>} : vector<16x128xbf16>, vector<128x128xbf16>, vector<16x128xf32> -> vector<16x128xf32>
      %c0_15 = arith.constant 0 : index
      %c0_16 = arith.constant 0 : index
      %16 = vector.load %arg5[%c0_15, %c0_16] : memref<1x128xf32, #tpu.memory_space<vmem>>, vector<1x128xf32>
      %17 = vector.broadcast %16 : vector<1x128xf32> to vector<16x128xf32>
      %18 = arith.addf %15, %17 : vector<16x128xf32>
      %cst_17 = arith.constant 0.000000e+00 : f32
      %19 = vector.broadcast %cst_17 : f32 to vector<16x128xf32>
      %20 = arith.maximumf %18, %19 : vector<16x128xf32>
      %c0_18 = arith.constant 0 : index
      %c0_19 = arith.constant 0 : index
      %21 = vector.load %arg9[%c0_18, %c0_19] : memref<16x128xf32, #tpu.memory_space<vmem>>, vector<16x128xf32>
      tpu.vector_store %arg9[%c0_18, %c0_19], %20 {strides = array<i32>} : memref<16x128xf32, #tpu.memory_space<vmem>>, vector<16x128xf32>,
    } else {
    }
    %c0 = arith.constant 0 : index
    %c0_1 = arith.constant 0 : index
    %3 = vector.load %arg9[%c0, %c0_1] : memref<16x128xf32, #tpu.memory_space<vmem>>, vector<16x128xf32>
    %4 = arith.truncf %3 : vector<16x128xf32> to vector<16x128xbf16>
    %c0_2 = arith.constant 0 : index
    %c0_3 = arith.constant 0 : index
    %5 = vector.load %arg6[%c0_2, %c0_3] : memref<128x128xbf16, #tpu.memory_space<vmem>>, vector<128x128xbf16>
    %cst = arith.constant dense<0.000000e+00> : vector<16x128xf32>
    %6 = tpu.matmul %4, %5, %cst {dimension_numbers = #tpu.dot_dimension_numbers<[1], [0], [0], [1], [0, 0, 1, 1], [], []>} : vector<16x128xbf16>, vector<128x128xbf16>, vector<16x128xf32> -> vector<16x128xf32>
    %c0_4 = arith.constant 0 : index
    %c0_5 = arith.constant 0 : index
    %7 = vector.load %arg7[%c0_4, %c0_5] : memref<1x128xf32, #tpu.memory_space<vmem>>, vector<1x128xf32>
    %8 = vector.broadcast %7 : vector<1x128xf32> to vector<16x128xf32>
    %9 = arith.addf %6, %8 : vector<16x128xf32>
    %c0_6 = arith.constant 0 : index
    %c0_7 = arith.constant 0 : index
    %10 = vector.load %arg3[%c0_6, %c0_7] : memref<16x128xf32, #tpu.memory_space<vmem>>, vector<16x128xf32>
    %11 = arith.addf %10, %9 : vector<16x128xf32>
    %c0_8 = arith.constant 0 : index
    %c0_9 = arith.constant 0 : index
    %12 = vector.load %arg8[%c0_8, %c0_9] : memref<16x128xf32, #tpu.memory_space<vmem>>, vector<16x128xf32>
    tpu.vector_store %arg8[%c0_8, %c0_9], %11 {strides = array<i32>} : memref<16x128xf32, #tpu.memory_space<vmem>>, vector<16x128xf32>,
    return
  }
  func.func @transform_0(%arg0: i32, %arg1: i32) -> (i32, i32) {
    %c0_i32 = arith.constant 0 : i32
    %c0_i32_0 = arith.constant 0 : i32
    return %arg0, %c0_i32 : i32, i32
  }
  func.func @transform_1(%arg0: i32, %arg1: i32) -> (i32, i32) {
    %c0_i32 = arith.constant 0 : i32
    return %arg0, %arg1 : i32, i32
  }
  func.func @transform_2(%arg0: i32, %arg1: i32) -> (i32, i32) {
    %c0_i32 = arith.constant 0 : i32
    %c0_i32_0 = arith.constant 0 : i32
    %c0_i32_1 = arith.constant 0 : i32
    return %c0_i32, %c0_i32_0 : i32, i32
  }
  func.func @transform_3(%arg0: i32, %arg1: i32) -> (i32, i32) {
    %c0_i32 = arith.constant 0 : i32
    %c0_i32_0 = arith.constant 0 : i32
    %c0_i32_1 = arith.constant 0 : i32
    return %c0_i32, %c0_i32_0 : i32, i32
  }
  func.func @transform_4(%arg0: i32, %arg1: i32) -> (i32, i32) {
    %c0_i32 = arith.constant 0 : i32
    %c0_i32_0 = arith.constant 0 : i32
    return %c0_i32, %arg1 : i32, i32
  }
  func.func @transform_5(%arg0: i32, %arg1: i32) -> (i32, i32) {
    %c0_i32 = arith.constant 0 : i32
    %c0_i32_0 = arith.constant 0 : i32
    return %c0_i32, %arg1 : i32, i32
  }
  func.func @transform_6(%arg0: i32, %arg1: i32) -> (i32, i32) {
    %c0_i32 = arith.constant 0 : i32
    return %arg0, %arg1 : i32, i32
  }
}

</mosaic_0001>

<bundles_post_ra>
// kernel: parallel_adapter_wrapper_forward.1
= control target key start
LH: loop header
LB: loop body
LE: loop exit
PB: predicated region body
PF: predicated region fallthrough
CT: control target
= control target key end

     0   :  { %v373_v0 = vmov 0.0   ;;  %vm374_vm0 = vmmov 0   ;;  %s479_s2 = inlined_call_operand.vmem [shape: bf16[128,128], index: 2, kind: input, shape index: {}]   ;;  %s480_s4 = inlined_call_operand.vmem [shape: bf16[128,128], index: 4, kind: input, shape index: {}]   ;;  %s481_s0 = inlined_call_operand.vmem [shape: bf16[16,128], index: 0, kind: input, shape index: {}]   ;;  %s482_s3 = inlined_call_operand.vmem [shape: f32[1,128], index: 3, kind: input, shape index: {}]   ;;  %s483_s5 = inlined_call_operand.vmem [shape: f32[1,128], index: 5, kind: input, shape index: {}]   ;;  %s484_s1 = inlined_call_operand.vmem [shape: f32[16,128], index: 1, kind: input, shape index: {}, may-alias: {1,6}]   ;;  %s485_s6 = inlined_call_operand.vmem [shape: f32[16,128], index: 6, kind: output, shape index: {}, may-alias: {1,6}]  }
   0x1   :  { %314 = vmatprep.subr.bf16.mxu0 %v373_v0  ;;  %v356_v1 = vld [vmem:[%s479_s2 + $0x38] sm:$0xff]   ;;  %330 = vmatprep.mubr.msk.bf16.mxu0 %vm374_vm0, %v373_v0  ;;  %v357_v2 = vld [vmem:[%s479_s2 + $0x30] sm:$0xff]   ;;  %v358_v3 = vld [vmem:[%s479_s2 + $0x28] sm:$0xff]  }
   0x2   :  { %334 = vmatprep.subr.bf16.mxu1 %v373_v0  ;;  %350 = vmatprep.mubr.msk.bf16.mxu1 %vm374_vm0, %v373_v0  ;;  %v365_v4 = vld [vmem:[%s480_s4 + $0x38] sm:$0xff]   ;;  %v359_v5 = vld [vmem:[%s479_s2 + $0x20] sm:$0xff]   ;;  %v366_v6 = vld [vmem:[%s480_s4 + $0x30] sm:$0xff]  }
   0x3   :  { %315 = vmatpush3.bf16.msra.mxu0 %v356_v1  ;;  %335 = vmatpush3.bf16.msra.mxu1 %v365_v4  ;;  %v360_v7 = vld [vmem:[%s479_s2 + $0x18] sm:$0xff]   ;;  %v367_v8 = vld [vmem:[%s480_s4 + $0x28] sm:$0xff]   ;;  %v361_v9 = vld [vmem:[%s479_s2 + $0x10] sm:$0xff]  }
   0x4   :  { %316 = vmatprep.subr.bf16.mxu0 %v373_v0  ;;  %336 = vmatprep.subr.bf16.mxu1 %v373_v0  ;;  %v368_v10 = vld [vmem:[%s480_s4 + $0x20] sm:$0xff]   ;;  %v362_v11 = vld [vmem:[%s479_s2 + $0x8] sm:$0xff]   ;;  %v369_v12 = vld [vmem:[%s480_s4 + $0x18] sm:$0xff]  }
   0x5   :  { %v363_v13 = vld [vmem:[%s479_s2] sm:$0xff]   ;;  %v370_v15 = vld [vmem:[%s480_s4 + $0x10] sm:$0xff]   ;;  %v371_v16 = vld [vmem:[%s480_s4 + $0x8] sm:$0xff]  }
   0x6   :  { %v364_v14 = vld [vmem:[%s481_s0] sm:$0xff]   ;;  %v268_v35 = vld [vmem:[%s484_s1 + $0x8] sm:$0xff] }
   0x7   :  { %317 = vmatpush3.bf16.msra.mxu0 %v357_v2  ;;  %337 = vmatpush3.bf16.msra.mxu1 %v366_v6  ;;  %v372_v17 = vld [vmem:[%s480_s4] sm:$0xff]  }
   0x8   :  { %318 = vmatprep.subr.bf16.mxu0 %v373_v0  ;;  %338 = vmatprep.subr.bf16.mxu1 %v373_v0  ;;  %v277_v18 = vld [vmem:[%s482_s3] ss:$0 sm:$0xff] }
   0x9   :  { %v287_v28 = vld [vmem:[%s483_s5] ss:$0 sm:$0xff] }
   0xa   :  { %v267_v30 = vld [vmem:[%s484_s1] sm:$0xff] }
   0xb   :  { %319 = vmatpush3.bf16.msra.mxu0 %v358_v3  ;;  %339 = vmatpush3.bf16.msra.mxu1 %v367_v8 }
   0xc   :  { %320 = vmatprep.subr.bf16.mxu0 %v373_v0  ;;  %340 = vmatprep.subr.bf16.mxu1 %v373_v0 }
   0xf   :  { %321 = vmatpush3.bf16.msra.mxu0 %v359_v5  ;;  %341 = vmatpush3.bf16.msra.mxu1 %v368_v10 }
  0x10   :  { %322 = vmatprep.subr.bf16.mxu0 %v373_v0  ;;  %342 = vmatprep.subr.bf16.mxu1 %v373_v0 }
  0x13   :  { %323 = vmatpush3.bf16.msra.mxu0 %v360_v7  ;;  %343 = vmatpush3.bf16.msra.mxu1 %v369_v12 }
  0x14   :  { %324 = vmatprep.subr.bf16.mxu0 %v373_v0  ;;  %344 = vmatprep.subr.bf16.mxu1 %v373_v0 }
  0x17   :  { %325 = vmatpush3.bf16.msra.mxu0 %v361_v9  ;;  %345 = vmatpush3.bf16.msra.mxu1 %v370_v15 }
  0x18   :  { %326 = vmatprep.subr.bf16.mxu0 %v373_v0  ;;  %346 = vmatprep.subr.bf16.mxu1 %v373_v0 }
  0x1b   :  { %327 = vmatpush3.bf16.msra.mxu0 %v362_v11  ;;  %347 = vmatpush3.bf16.msra.mxu1 %v371_v16 }
  0x1c   :  { %328 = vmatprep.subr.bf16.mxu0 %v373_v0  ;;  %348 = vmatprep.subr.bf16.mxu1 %v373_v0 }
  0x1f   :  { %329 = vmatpush3.bf16.msra.mxu0 %v363_v13  ;;  %349 = vmatpush3.bf16.msra.mxu1 %v372_v17 }
  0x22   :  { %331 = vmatmul.mubr.bf16.vlgmr.msra.gmra.mxu0 %v364_v14 }
  0xe2   :  { %v141_v19 = vpop.f32.mrf.mxu0 }
  0xe3   :  { %v142_v21 = vadd.f32 %v277_v18, %v141_v19 }
  0xe4   :  { %v332_v20 = vpop.f32.mrf.mxu0 }
  0xe5   :  { %v148_v25 = vmax.f32 %v142_v21, 0.0 }
  0xe6   :  { %v144_v22 = vpop.f32.mrf.mxu0 }
  0xe7   :  { %v145_v23 = vadd.f32 %v277_v18, %v144_v22 }
  0xe8   :  { %v333_v24 = vpop.f32.mrf.mxu0 }
  0xe9   :  { %v149_v26 = vmax.f32 %v145_v23, 0.0 }
  0xeb   :  { %v154_v27 = vpack.c.bf16 %v149_v26, %v148_v25 }
  0xed   :  { %351 = vmatmul.mubr.bf16.vlgmr.msra.gmra.mxu1 %v154_v27 }
 0x1ad   :  { %v260_v29 = vpop.f32.mrf.mxu1 }
 0x1ae   :  { %v261_v31 = vadd.f32 %v287_v28, %v260_v29 }
 0x1af   :  { %v352_v32 = vpop.f32.mrf.mxu1 }
 0x1b0   :  { %v269_v33 = vadd.f32 %v267_v30, %v261_v31 }
 0x1b1   :  { %v263_v34 = vpop.f32.mrf.mxu1 }
 0x1b2   :  { %271 = vst [vmem:[%s485_s6] sm:$0xff] %v269_v33  ;;  %v264_v36 = vadd.f32 %v287_v28, %v263_v34 }
 0x1b3   :  { %v353_v37 = vpop.f32.mrf.mxu1 }
 0x1b4   :  { %v270_v38 = vadd.f32 %v268_v35, %v264_v36 }
 0x1b6   :  { %272 = vst [vmem:[%s485_s6 + $0x8] sm:$0xff] %v270_v38 }

</bundles_post_ra>
